<compile_context>
chip_gen: v6e
topology: v6e:2x2x1
jax: 0.10.0
libtpu: 0.0.40
codegen_flags: <defaults>
</compile_context>

<pallas_src>
import jax
import jax.numpy as jnp
from jax.experimental import pallas as pl
from jax.experimental.pallas import tpu as pltpu


def _round_up(x, m):
    return (x + m - 1) // m * m


def _geonet_kernel(intr_ref,             # SMEM (4,) = [cx, cy, 1/fx, 1/fy]
                   x_ref,                # VMEM (192, tile_n)   input features
                   maps_ref,             # VMEM (3, tile_n)     rows = [xmap, ymap, ds]
                   w1_ref, b1_ref,       # VMEM (64, 192), (64, 1)
                   w2_ref, b2_ref,       # VMEM (32, 64),  (32, 1)
                   pt0_ref, pt1_ref, pt2_ref):   # VMEM (32, tile_n) each
    cx = intr_ref[0]
    cy = intr_ref[1]
    inv_fx = intr_ref[2]
    inv_fy = intr_ref[3]

    # conv_1 (1x1) + ReLU  -> MXU matmul over the channel (sublane) dim
    h1 = jnp.dot(w1_ref[...], x_ref[...], preferred_element_type=jnp.float32)
    h1 = jnp.maximum(h1 + b1_ref[...], 0.0)

    # conv_2 (1x1) + ReLU
    h2 = jnp.dot(w2_ref[...], h1, preferred_element_type=jnp.float32)
    h2 = jnp.maximum(h2 + b2_ref[...], 0.0)

    xm = maps_ref[0:1, :]                 # (1, tile_n) sublane-broadcast rows
    ym = maps_ref[1:2, :]
    dsv = maps_ref[2:3, :]

    dx = h2 * dsv                         # (32, tile_n)
    pt2_ref[...] = dx
    pt0_ref[...] = (ym - cx) * dx * inv_fx
    pt1_ref[...] = (xm - cy) * dx * inv_fy


def geonet_forward(params, feat_feature, intrinsic, xmap, ymap, ds, *, tile_n=2048):
    # Weights in the PyTorch conv orientation: w (out_ch, in_ch), b (out_ch,)
    w1, b1, w2, b2 = params
    bs, c_in, H, W = feat_feature.shape
    c_mid, c_out = w1.shape[0], w2.shape[0]
    assert w1.shape == (c_mid, c_in) and w2.shape == (c_out, c_mid)

    # Intrinsic unpacking, mirrors the torch module exactly.
    if intrinsic.ndim == 3:
        fx, fy, cx, cy = (intrinsic[0, 0, 0], intrinsic[0, 1, 1],
                          intrinsic[0, 0, 2], intrinsic[0, 1, 2])
    else:
        fx, fy, cx, cy = (intrinsic[0, 0], intrinsic[0, 1],
                          intrinsic[0, 2], intrinsic[0, 3])
    # Pre-compute reciprocals so the kernel only multiplies.
    intr = jnp.stack([cx, cy, 1.0 / fx, 1.0 / fy]).astype(jnp.float32)

    Npix = H * W
    # Large pixel tiles (multiple of 128), capped to the image size.
    tile_n = max(128, min(tile_n, _round_up(Npix, 128)))
    Np = _round_up(Npix, tile_n)

    # (bs, C, H, W) -> (bs, C, H*W): minor-dim-preserving reshape, no transpose.
    x = feat_feature.reshape(bs, c_in, Npix).astype(jnp.float32)
    maps = jnp.concatenate([xmap.reshape(bs, 1, Npix),
                            ymap.reshape(bs, 1, Npix),
                            ds.reshape(bs, 1, Npix)], axis=1).astype(jnp.float32)
    if Np != Npix:
        pad = ((0, 0), (0, 0), (0, Np - Npix))
        x = jnp.pad(x, pad)
        maps = jnp.pad(maps, pad)       # ds padded with 0 -> padded outputs are 0

    w1f = w1.astype(jnp.float32)
    w2f = w2.astype(jnp.float32)
    b1c = b1.reshape(c_mid, 1).astype(jnp.float32)
    b2c = b2.reshape(c_out, 1).astype(jnp.float32)

    grid = (bs, Np // tile_n)

    stream = lambda ch: pl.BlockSpec((None, ch, tile_n), lambda b, i: (b, 0, i))
    resident = lambda r, c: pl.BlockSpec((r, c), lambda b, i: (0, 0))

    flops = 2 * bs * Np * (c_in * c_mid + c_mid * c_out)
    bytes_accessed = (4 * bs * Np * (c_in + 3 + 3 * c_out)
                      + 4 * (c_in * c_mid + c_mid * c_out + c_mid + c_out))

    pt0, pt1, pt2 = pl.pallas_call(
        _geonet_kernel,
        out_shape=[jax.ShapeDtypeStruct((bs, c_out, Np), jnp.float32)] * 3,
        grid_spec=pl.GridSpec(
            grid=grid,
            in_specs=[
                pl.BlockSpec(memory_space=pltpu.MemorySpace.SMEM),  # intrinsics
                stream(c_in),               # features   (192, tile_n)
                stream(3),                  # xmap|ymap|ds (3, tile_n)
                resident(c_mid, c_in),      # w1 (64, 192)
                resident(c_mid, 1),         # b1 (64, 1)
                resident(c_out, c_mid),     # w2 (32, 64)
                resident(c_out, 1),         # b2 (32, 1)
            ],
            out_specs=[stream(c_out)] * 3,
        ),
        compiler_params=pltpu.CompilerParams(
            dimension_semantics=("parallel", "parallel"),
            vmem_limit_bytes=32 * 1024 * 1024),
        cost_estimate=pl.CostEstimate(flops=flops, transcendentals=0,
                                      bytes_accessed=bytes_accessed),
    )(intr, x, maps, w1f, b1c, w2f, b2c)

    def crop(a):
        return a[:, :, :Npix].reshape(bs, c_out, H, W)

    # torch.stack((pt0, pt1, pt2), dim=2) -> (bs, 32, 3, H, W)
    return jnp.stack([crop(pt0), crop(pt1), crop(pt2)], axis=2)


def geonet_reference(params, feat, intrinsic, xmap, ymap, ds):
    """Pure-JAX reference of the torch forward (for validation)."""
    w1, b1, w2, b2 = params
    h1 = jax.nn.relu(jnp.einsum('bchw,oc->bohw', feat, w1, precision='highest')
                     + b1.reshape(1, -1, 1, 1))
    h2 = jax.nn.relu(jnp.einsum('bchw,oc->bohw', h1, w2, precision='highest')
                     + b2.reshape(1, -1, 1, 1))
    dx = h2 * ds
    if intrinsic.ndim == 3:
        fx, fy, cx, cy = (intrinsic[0, 0, 0], intrinsic[0, 1, 1],
                          intrinsic[0, 0, 2], intrinsic[0, 1, 2])
    else:
        fx, fy, cx, cy = (intrinsic[0, 0], intrinsic[0, 1],
                          intrinsic[0, 2], intrinsic[0, 3])
    xm = jnp.broadcast_to(xmap, dx.shape)
    ym = jnp.broadcast_to(ymap, dx.shape)
    pt0 = (ym - cx) * dx / fx
    pt1 = (xm - cy) * dx / fy
    return jnp.stack([pt0, pt1, dx], axis=2)


if __name__ == "__main__":
    key = jax.random.PRNGKey(0)
    ks = jax.random.split(key, 6)

    bs, H, W = 2, 16, 16
    c_in, c_mid, c_out = 192, 64, 32

    # Deterministic synthetic parameters (torch conv orientation: (out, in)).
    w1 = jax.random.normal(ks[0], (c_mid, c_in), jnp.float32) * 0.05
    b1 = jax.random.normal(ks[1], (c_mid,), jnp.float32) * 0.05
    w2 = jax.random.normal(ks[2], (c_out, c_mid), jnp.float32) * 0.05
    b2 = jax.random.normal(ks[3], (c_out,), jnp.float32) * 0.05
    params = (w1, b1, w2, b2)

    feat = jax.random.normal(ks[4], (bs, c_in, H, W), jnp.float32)
    ds = jax.random.uniform(ks[5], (bs, 1, H, W), jnp.float32, 0.5, 2.0)

    # Pixel-coordinate maps, shape (bs, 1, H, W).
    col = jnp.broadcast_to(jnp.arange(W, dtype=jnp.float32)[None, None, None, :],
                           (bs, 1, H, W))
    row = jnp.broadcast_to(jnp.arange(H, dtype=jnp.float32)[None, None, :, None],
                           (bs, 1, H, W))
    xmap, ymap = col, row

    # (1, 3, 3) intrinsic matrix -> takes the dim==3 branch.
    intrinsic = jnp.array([[[500.0, 0.0, 8.0],
                            [0.0, 480.0, 7.5],
                            [0.0, 0.0, 1.0]]], jnp.float32)

    out = geonet_forward(params, feat, intrinsic, xmap, ymap, ds)
    out = jax.block_until_ready(out)

    ref = geonet_reference(params, feat, intrinsic, xmap, ymap, ds)
    assert out.shape == (bs, c_out, 3, H, W), out.shape
    assert jnp.allclose(out, ref, atol=1e-4, rtol=1e-4), float(jnp.abs(out - ref).max())

    print("KERNEL_OK")
</pallas_src>

<mosaic_0001>
module attributes {stable_mosaic.version = 11 : i64} {
  func.func @_geonet_kernel(%arg0: i32, %arg1: i32, %arg2: memref<4xf32, #tpu.memory_space<smem>>, %arg3: memref<1x192x256xf32, #tpu.memory_space<vmem>>, %arg4: memref<1x3x256xf32, #tpu.memory_space<vmem>>, %arg5: memref<64x192xf32, #tpu.memory_space<vmem>>, %arg6: memref<64x1xf32, #tpu.memory_space<vmem>>, %arg7: memref<32x64xf32, #tpu.memory_space<vmem>>, %arg8: memref<32x1xf32, #tpu.memory_space<vmem>>, %arg9: memref<1x32x256xf32, #tpu.memory_space<vmem>>, %arg10: memref<1x32x256xf32, #tpu.memory_space<vmem>>, %arg11: memref<1x32x256xf32, #tpu.memory_space<vmem>>) attributes {dimension_semantics = [#tpu.dimension_semantics<parallel>, #tpu.dimension_semantics<parallel>], iteration_bounds = array<i64: 2, 1>, scalar_prefetch = 0 : i64, scratch_operands = 0 : i64, tpu.core_type = #tpu.core_type<tc>, window_params = [{transform_indices = @transform_0, window_bounds = array<i64: 4>}, {transform_indices = @transform_1, window_bounds = array<i64: 1, 192, 256>}, {transform_indices = @transform_2, window_bounds = array<i64: 1, 3, 256>}, {pipeline_mode = #tpu.pipeline_mode<synchronous>, transform_indices = @transform_3, window_bounds = array<i64: 64, 192>}, {pipeline_mode = #tpu.pipeline_mode<synchronous>, transform_indices = @transform_4, window_bounds = array<i64: 64, 1>}, {pipeline_mode = #tpu.pipeline_mode<synchronous>, transform_indices = @transform_5, window_bounds = array<i64: 32, 64>}, {pipeline_mode = #tpu.pipeline_mode<synchronous>, transform_indices = @transform_6, window_bounds = array<i64: 32, 1>}, {transform_indices = @transform_7, window_bounds = array<i64: 1, 32, 256>}, {transform_indices = @transform_8, window_bounds = array<i64: 1, 32, 256>}, {transform_indices = @transform_9, window_bounds = array<i64: 1, 32, 256>}]} {
    %c0 = arith.constant 0 : index
    %0 = memref.load %arg2[%c0] : memref<4xf32, #tpu.memory_space<smem>>
    %c1 = arith.constant 1 : index
    %1 = memref.load %arg2[%c1] : memref<4xf32, #tpu.memory_space<smem>>
    %c2 = arith.constant 2 : index
    %2 = memref.load %arg2[%c2] : memref<4xf32, #tpu.memory_space<smem>>
    %c3 = arith.constant 3 : index
    %3 = memref.load %arg2[%c3] : memref<4xf32, #tpu.memory_space<smem>>
    %c0_0 = arith.constant 0 : index
    %c0_1 = arith.constant 0 : index
    %4 = vector.load %arg5[%c0_0, %c0_1] : memref<64x192xf32, #tpu.memory_space<vmem>>, vector<64x192xf32>
    %c0_2 = arith.constant 0 : index
    %c0_3 = arith.constant 0 : index
    %c0_4 = arith.constant 0 : index
    %5 = vector.load %arg3[%c0_2, %c0_3, %c0_4] : memref<1x192x256xf32, #tpu.memory_space<vmem>>, vector<1x192x256xf32>
    %6 = vector.shape_cast %5 : vector<1x192x256xf32> to vector<192x256xf32>
    %cst = arith.constant dense<0.000000e+00> : vector<64x256xf32>
    %7 = tpu.matmul %4, %6, %cst {dimension_numbers = #tpu.dot_dimension_numbers<[1], [0], [0], [1], [0, 0, 1, 1], [], []>} : vector<64x192xf32>, vector<192x256xf32>, vector<64x256xf32> -> vector<64x256xf32>
    %c0_5 = arith.constant 0 : index
    %c0_6 = arith.constant 0 : index
    %8 = vector.load %arg6[%c0_5, %c0_6] : memref<64x1xf32, #tpu.memory_space<vmem>>, vector<64x1xf32>
    %9 = vector.broadcast %8 : vector<64x1xf32> to vector<64x256xf32>
    %10 = arith.addf %7, %9 : vector<64x256xf32>
    %cst_7 = arith.constant 0.000000e+00 : f32
    %11 = vector.broadcast %cst_7 : f32 to vector<64x256xf32>
    %12 = arith.maximumf %10, %11 : vector<64x256xf32>
    %c0_8 = arith.constant 0 : index
    %c0_9 = arith.constant 0 : index
    %13 = vector.load %arg7[%c0_8, %c0_9] : memref<32x64xf32, #tpu.memory_space<vmem>>, vector<32x64xf32>
    %cst_10 = arith.constant dense<0.000000e+00> : vector<32x256xf32>
    %14 = tpu.matmul %13, %12, %cst_10 {dimension_numbers = #tpu.dot_dimension_numbers<[1], [0], [0], [1], [0, 0, 1, 1], [], []>} : vector<32x64xf32>, vector<64x256xf32>, vector<32x256xf32> -> vector<32x256xf32>
    %c0_11 = arith.constant 0 : index
    %c0_12 = arith.constant 0 : index
    %15 = vector.load %arg8[%c0_11, %c0_12] : memref<32x1xf32, #tpu.memory_space<vmem>>, vector<32x1xf32>
    %16 = vector.broadcast %15 : vector<32x1xf32> to vector<32x256xf32>
    %17 = arith.addf %14, %16 : vector<32x256xf32>
    %cst_13 = arith.constant 0.000000e+00 : f32
    %18 = vector.broadcast %cst_13 : f32 to vector<32x256xf32>
    %19 = arith.maximumf %17, %18 : vector<32x256xf32>
    %c0_14 = arith.constant 0 : index
    %c0_15 = arith.constant 0 : index
    %c0_16 = arith.constant 0 : index
    %20 = vector.load %arg4[%c0_14, %c0_15, %c0_16] : memref<1x3x256xf32, #tpu.memory_space<vmem>>, vector<1x1x256xf32>
    %21 = vector.shape_cast %20 : vector<1x1x256xf32> to vector<1x256xf32>
    %c0_17 = arith.constant 0 : index
    %c1_18 = arith.constant 1 : index
    %c0_19 = arith.constant 0 : index
    %22 = vector.load %arg4[%c0_17, %c1_18, %c0_19] : memref<1x3x256xf32, #tpu.memory_space<vmem>>, vector<1x1x256xf32>
    %23 = vector.shape_cast %22 : vector<1x1x256xf32> to vector<1x256xf32>
    %c0_20 = arith.constant 0 : index
    %c2_21 = arith.constant 2 : index
    %c0_22 = arith.constant 0 : index
    %24 = vector.load %arg4[%c0_20, %c2_21, %c0_22] : memref<1x3x256xf32, #tpu.memory_space<vmem>>, vector<1x1x256xf32>
    %25 = vector.shape_cast %24 : vector<1x1x256xf32> to vector<1x256xf32>
    %26 = vector.broadcast %25 : vector<1x256xf32> to vector<32x256xf32>
    %27 = arith.mulf %19, %26 : vector<32x256xf32>
    %c0_23 = arith.constant 0 : index
    %c0_24 = arith.constant 0 : index
    %c0_25 = arith.constant 0 : index
    %28 = vector.load %arg11[%c0_23, %c0_24, %c0_25] : memref<1x32x256xf32, #tpu.memory_space<vmem>>, vector<1x32x256xf32>
    %29 = vector.shape_cast %28 : vector<1x32x256xf32> to vector<32x256xf32>
    %30 = vector.shape_cast %27 : vector<32x256xf32> to vector<1x32x256xf32>
    tpu.vector_store %arg11[%c0_23, %c0_24, %c0_25], %30 {strides = array<i32>} : memref<1x32x256xf32, #tpu.memory_space<vmem>>, vector<1x32x256xf32>,
    %31 = vector.broadcast %0 : f32 to vector<1x256xf32>
    %32 = arith.subf %23, %31 : vector<1x256xf32>
    %33 = vector.broadcast %32 : vector<1x256xf32> to vector<32x256xf32>
    %34 = arith.mulf %33, %27 : vector<32x256xf32>
    %35 = vector.broadcast %2 : f32 to vector<32x256xf32>
    %36 = arith.mulf %34, %35 : vector<32x256xf32>
    %c0_26 = arith.constant 0 : index
    %c0_27 = arith.constant 0 : index
    %c0_28 = arith.constant 0 : index
    %37 = vector.load %arg9[%c0_26, %c0_27, %c0_28] : memref<1x32x256xf32, #tpu.memory_space<vmem>>, vector<1x32x256xf32>
    %38 = vector.shape_cast %37 : vector<1x32x256xf32> to vector<32x256xf32>
    %39 = vector.shape_cast %36 : vector<32x256xf32> to vector<1x32x256xf32>
    tpu.vector_store %arg9[%c0_26, %c0_27, %c0_28], %39 {strides = array<i32>} : memref<1x32x256xf32, #tpu.memory_space<vmem>>, vector<1x32x256xf32>,
    %40 = vector.broadcast %1 : f32 to vector<1x256xf32>
    %41 = arith.subf %21, %40 : vector<1x256xf32>
    %42 = vector.broadcast %41 : vector<1x256xf32> to vector<32x256xf32>
    %43 = arith.mulf %42, %27 : vector<32x256xf32>
    %44 = vector.broadcast %3 : f32 to vector<32x256xf32>
    %45 = arith.mulf %43, %44 : vector<32x256xf32>
    %c0_29 = arith.constant 0 : index
    %c0_30 = arith.constant 0 : index
    %c0_31 = arith.constant 0 : index
    %46 = vector.load %arg10[%c0_29, %c0_30, %c0_31] : memref<1x32x256xf32, #tpu.memory_space<vmem>>, vector<1x32x256xf32>
    %47 = vector.shape_cast %46 : vector<1x32x256xf32> to vector<32x256xf32>
    %48 = vector.shape_cast %45 : vector<32x256xf32> to vector<1x32x256xf32>
    tpu.vector_store %arg10[%c0_29, %c0_30, %c0_31], %48 {strides = array<i32>} : memref<1x32x256xf32, #tpu.memory_space<vmem>>, vector<1x32x256xf32>,
    return
  }
  func.func @transform_0(%arg0: i32, %arg1: i32) -> i32 {
    %c0_i32 = arith.constant 0 : i32
    %c0_i32_0 = arith.constant 0 : i32
    return %c0_i32 : i32
  }
  func.func @transform_1(%arg0: i32, %arg1: i32) -> (i32, i32, i32) {
    %c0_i32 = arith.constant 0 : i32
    %c0_i32_0 = arith.constant 0 : i32
    return %arg0, %c0_i32, %arg1 : i32, i32, i32
  }
  func.func @transform_2(%arg0: i32, %arg1: i32) -> (i32, i32, i32) {
    %c0_i32 = arith.constant 0 : i32
    %c0_i32_0 = arith.constant 0 : i32
    return %arg0, %c0_i32, %arg1 : i32, i32, i32
  }
  func.func @transform_3(%arg0: i32, %arg1: i32) -> (i32, i32) {
    %c0_i32 = arith.constant 0 : i32
    %c0_i32_0 = arith.constant 0 : i32
    %c0_i32_1 = arith.constant 0 : i32
    return %c0_i32, %c0_i32_0 : i32, i32
  }
  func.func @transform_4(%arg0: i32, %arg1: i32) -> (i32, i32) {
    %c0_i32 = arith.constant 0 : i32
    %c0_i32_0 = arith.constant 0 : i32
    %c0_i32_1 = arith.constant 0 : i32
    return %c0_i32, %c0_i32_0 : i32, i32
  }
  func.func @transform_5(%arg0: i32, %arg1: i32) -> (i32, i32) {
    %c0_i32 = arith.constant 0 : i32
    %c0_i32_0 = arith.constant 0 : i32
    %c0_i32_1 = arith.constant 0 : i32
    return %c0_i32, %c0_i32_0 : i32, i32
  }
  func.func @transform_6(%arg0: i32, %arg1: i32) -> (i32, i32) {
    %c0_i32 = arith.constant 0 : i32
    %c0_i32_0 = arith.constant 0 : i32
    %c0_i32_1 = arith.constant 0 : i32
    return %c0_i32, %c0_i32_0 : i32, i32
  }
  func.func @transform_7(%arg0: i32, %arg1: i32) -> (i32, i32, i32) {
    %c0_i32 = arith.constant 0 : i32
    %c0_i32_0 = arith.constant 0 : i32
    return %arg0, %c0_i32, %arg1 : i32, i32, i32
  }
  func.func @transform_8(%arg0: i32, %arg1: i32) -> (i32, i32, i32) {
    %c0_i32 = arith.constant 0 : i32
    %c0_i32_0 = arith.constant 0 : i32
    return %arg0, %c0_i32, %arg1 : i32, i32, i32
  }
  func.func @transform_9(%arg0: i32, %arg1: i32) -> (i32, i32, i32) {
    %c0_i32 = arith.constant 0 : i32
    %c0_i32_0 = arith.constant 0 : i32
    return %arg0, %c0_i32, %arg1 : i32, i32, i32
  }
}

</mosaic_0001>

<bundles_post_ra>
// kernel: tpu_custom_call.1
= control target key start
LH: loop header
LB: loop body
LE: loop exit
PB: predicated region body
PF: predicated region fallthrough
CT: control target
= control target key end

     0   :  { %s2177_s0 = inlined_call_operand.vmem [shape: f32[4], index: 0, kind: input, shape index: {}]   ;;  %s2178_s1 = inlined_call_operand.hbm [shape: f32[2,192,256], index: 1, kind: input, shape index: {}]   ;;  %s2179_s2 = inlined_call_operand.vmem [shape: f32[2,3,256], index: 2, kind: input, shape index: {}]   ;;  %s2180_s3 = inlined_call_operand.vmem [shape: f32[64,192], index: 3, kind: input, shape index: {}]   ;;  %s2181_s4 = inlined_call_operand.vmem [shape: f32[64,1], index: 4, kind: input, shape index: {}]   ;;  %s2182_s5 = inlined_call_operand.hbm [shape: f32[32,64], index: 5, kind: input, shape index: {}]   ;;  %s2183_s6 = inlined_call_operand.vmem [shape: f32[32,1], index: 6, kind: input, shape index: {}]   ;;  %s2184_s7 = inlined_call_operand.hbm [shape: f32[2,32,256], index: 7, kind: output, shape index: {0}]   ;;  %s2185_s8 = inlined_call_operand.hbm [shape: f32[2,32,256], index: 8, kind: output, shape index: {1}]   ;;  %s2186_s9 = inlined_call_operand.hbm [shape: f32[2,32,256], index: 9, kind: output, shape index: {2}]  }
   0x1   :  { %2201 = sst [smem:[#allocation22_spill]] %s2177_s0 }
   0x2   :  { %2202 = sst [smem:[#allocation23_spill]] %s2178_s1 }
   0x3   :  { %2203 = sst [smem:[#allocation24_spill]] %s2179_s2 }
   0x4   :  { %2204 = sst [smem:[#allocation25_spill]] %s2180_s3 }
   0x5   :  { %2205 = sst [smem:[#allocation26_spill]] %s2184_s7 }
   0x6   :  { %2206 = sst [smem:[#allocation27_spill]] %s2186_s9 }
   0x7   :  { %15 = vsyncpa [#allocation5], 0 }
   0x8   :  { %16 = vsyncpa [#allocation3], 0 }
   0x9   :  { %18 = vsyncpa [#allocation3 + $0x1], 0 }
   0xa   :  { %19 = vsyncpa [#allocation8], 0 }
   0xb   :  { %20 = vsyncpa [#allocation4], 0 }
   0xc   :  { %22 = vsyncpa [#allocation4 + $0x1], 0 }
   0xd   :  { %23 = vsyncpa [#allocation11], 0 }
   0xe   :  { %25 = vsyncpa [#allocation11 + $0x1], 0  ;;  %s1663_s30 = smov 0   ;;  %s1665_s10 = smov 0  }
   0xf   :  { %s1667_s11 = smov 0   ;;  %s1669_s12 = smov 0  }
  0x10   :  { %s1671_s13 = smov 0   ;;  %s1673_s14 = smov 0  }
  0x11 LB: > { %2207 = sst [smem:[#allocation18_spill]] %s1577_s30  ;;  %s1694_s15 = sadd.s32 4294967295, %s1597_s14   ;;  %s1597_s14 = sphi %s1673_s14, %s31_s14   ;;  %s1593_s13 = sphi %s1671_s13, %s2245_s13   ;;  %s1589_s12 = sphi %s1669_s12, %s2244_s12   ;;  %s1585_s11 = sphi %s1667_s11, %s2243_s11   ;;  %s1581_s10 = sphi %s1665_s10, %s2242_s10   ;;  %s1577_s30 = sphi %s1663_s30, %s2241_s30  }
  0x12   : > { %2208 = sst [smem:[#allocation19_spill]] %s1597_s14  ;;  %s2192_s16 = sadd.s32 4294967294, %s1597_s14  }
  0x13   : > { %p80_p0 = scmp.ne.s32.totalorder %s1585_s11, %s1581_s10  ;;  %p81_p1 = scmp.eq.s32.totalorder %s1597_s14, 0 }
  0x14   : > { %p86_p2 = scmp.ne.s32.totalorder %s1581_s10, %s1577_s30  ;;  %p2188_p3 = scmp.eq.s32.totalorder %s1694_s15, 0 }
  0x15   : > { %p224_p4 = scmp.eq.s32.totalorder %s1694_s15, 1  ;;  %p1705_p5 = por %p81_p1, %p80_p0 }
  0x16   : > { %p230_p6 = scmp.eq.s32.totalorder %s2192_s16, 1  ;;  %p1713_p7 = por %p2188_p3, %p86_p2 }
  0x17   : > { %p1717_p8 = por %p224_p4, %p80_p0  ;;  %p1233_p10 = scmp.ge.s32.totalorder %s1597_s14, 1 }
  0x18   : > { %s2210_s19 = scalar_select %p1713_p7, 1, 0 }
  0x19   : > { %s2211_s20 = scalar_select %p1717_p8, 1, 0 }
  0x1a   : > { %p1721_p9 = por %p230_p6, %p86_p2  ;;  %p293_p11 = scmp.lt.s32.totalorder %s1597_s14, 3 }
  0x1b   : > { %2212 = sst [smem:[#allocation20_spill]] %s2211_s20  ;;  %p1320_p0 = scmp.lt.s32.totalorder %s1597_s14, 2 }
  0x1c   : > { %s2213_s21 = scalar_select %p1721_p9, 1, 0 }
  0x1d   : > { %s2215_s0 = sld [smem:[#allocation22_spill]]  ;;  %p1730_p12 = pnand %p1233_p10, %p293_p11 }
  0x1e   : > { %2214 = sst [smem:[#allocation21_spill]] %s2213_s21  ;;  %p1740_p2 = pnand %p1320_p0, %p1705_p5 }
  0x1f   : > { %s2216_s25 = scalar_select %p1730_p12, 1, 0 }
  0x20   : > { %p1297_p1 = pneg %p1730_p12  ;;  %s1599_s27 = smov [#allocation7]  }
  0x21   : > { %s2217_s26 = scalar_select %p1740_p2, 1, 0 }
  0x22   : > { %s322_s28 = sshll.u32 %s1599_s27, 4  ;;  %p1746_p4 = pnand %p1297_p1, %p2188_p3  ;;  %s323_s28 = int_to_ptr.vmem [resolvable:$true] %s322_s28 }
  0x23   : > { %s306_s24 = sshll.u32 %s2215_s0, 4  ;;  %s307_s24 = int_to_ptr.vmem [resolvable:$true] %s306_s24 }
  0x24   : > { %s1384_s22 = scalar_lea.vmem %s307_s24, 16  ;;  %p1386_p10 = pneg %p1746_p4 }
  0x25   : > { %p1385_p6 = scmp.ne.s32.totalorder %s307_s24, %s1384_s22  ;;  %p1392_p9 = scmp.lt.s32.totalorder %s307_s24, %s307_s24 }
  0x26   : > { %p1393_p5 = scmp.lt.s32.totalorder %s1384_s22, %s1384_s22 }
  0x27   : > { %p1387_p11 = pnand %p1386_p10, %p1385_p6 }
  0x28   : > { %p1394_p0 = por %p1393_p5, %p1392_p9 }
  0x29   : > { %p1388_p13 = pneg %p1387_p11 }
  0x2b   : > { %p1395_p8 = pnand %p1394_p0, %p1388_p13 }
  0x2d   : > { %1398 = shalt.err (!%p1395_p8)
}
  0x2e   : > { %s1600_s18 = smov [#allocation2]   ;;  %s1410_s23 = scalar_lea.vmem %s323_s28, 512 }
  0x2f   : > { %1300 = dma.vmem_to_smem (!%p1746_p4), %s307_s24, 16, %s1600_s18, [#allocation5]  }
  0x30   : > { %p1411_p1 = scmp.ne.s32.totalorder %s323_s28, %s1410_s23  ;;  %p1418_p12 = scmp.lt.s32.totalorder %s323_s28, %s323_s28 }
  0x31   : > { %p1419_p2 = scmp.lt.s32.totalorder %s1410_s23, %s1410_s23 }
  0x32   : > { %p1413_p3 = pnand %p1411_p1, %p1386_p10 }
  0x33   : > { %p1420_p6 = por %p1419_p2, %p1418_p12 }
  0x34   : > { %p1414_p7 = pneg %p1413_p3 }
  0x36   : > { %p1421_p11 = pnand %p1420_p6, %p1414_p7 }
  0x38   : > { %1424 = shalt.err (!%p1421_p11)
}
  0x39   : > { %s1601_s27 = smov 128   ;;  %s1602_s22 = smov 8  }
  0x3a   : > { %1303 = dma.hbm_to_vmem [thread:$0]  (!%p1746_p4), %s2182_s5, 512, %s323_s28, [#allocation8], %s1601_s27, %s1601_s27, %s1602_s22  }
  0x3b   : > { %s339_s18 = sand.u32 1, %s1585_s11   ;;  %s43_s17 = sadd.s32 1, %s1593_s13 }
  0x3c   : > { %s1278_s0 = smul.u32 384, %s339_s18  ;;  %p45_p3 = scmp.ge.s32.totalorder %s43_s17, 2 }
  0x3d   : > { %s1279_s23 = smul.u32 6144, %s1593_s13  ;;  %s2219_s1 = sld [smem:[#allocation23_spill]] }
  0x3e   : > { %s2247_s17 = smov (%p45_p3, %s43_s17), 0  ;;  %s343_s9 = scalar_lea.vmem [#allocation6], %s1278_s0 }
  0x3f   : > { %s352_s7 = sshll.u32 %s343_s9, 4  ;;  %s68_s20 = ssub.s32 %s1593_s13, %s2247_s17  ;;  %s353_s7 = int_to_ptr.vmem [resolvable:$true] %s352_s7 }
  0x40   : > { %p1769_p7 = scmp.eq.s32.totalorder %s68_s20, 0  ;;  %s340_s16 = scalar_lea.sflag [#allocation3], %s339_s18 }
  0x41   : > { %p2221_p8 = scmp.ne.s32.totalorder %s2217_s26, 0  ;;  %s1438_s28 = scalar_lea.vmem %s353_s7, 6144 }
  0x42   : > { %p1439_p12 = scmp.ne.s32.totalorder %s353_s7, %s1438_s28  ;;  %s1603_s27 = smov [#allocation6]  }
  0x43   : > { %s351_s30 = scalar_lea.hbm %s2219_s1, %s1279_s23  ;;  %p1427_p9 = pneg %p2221_p8 }
  0x44   : > { %s1443_s22 = sshll.u32 %s1603_s27, 4  ;;  %s1444_s22 = int_to_ptr.vmem [resolvable:$false] %s1443_s22 }
  0x45   : > { %p1441_p13 = pnand %p1439_p12, %p1427_p9  ;;  %s1445_s14 = scalar_lea.vmem %s1444_s22, 12288 }
  0x46   : > { %p1446_p4 = scmp.lt.s32.totalorder %s353_s7, %s1444_s22  ;;  %p1447_p10 = scmp.lt.s32.totalorder %s1445_s14, %s1438_s28 }
  0x47   : > { %p1442_p2 = pneg %p1441_p13 }
  0x48   : > { %p1448_p5 = por %p1447_p10, %p1446_p4 }
  0x4a   : > { %p1449_p0 = pnand %p1448_p5, %p1442_p2 }
  0x4c   : > { %1452 = shalt.err (!%p1449_p0)
}
  0x4d   : > { %s1604_s0 = smov 256   ;;  %s1605_s9 = smov 16  }
  0x4e   : > { %1307 = dma.hbm_to_vmem [thread:$0]  (!%p2221_p8), %s351_s30, 6144, %s353_s7, %s340_s16, %s1604_s0, %s1604_s0, %s1605_s9  }
  0x4f   : > { %s2222_s20 = sadd.s32 1, %s1585_s11  ;;  %p2223_p1 = scmp.ne.s32.totalorder %s2216_s25, 0 }
  0x50   : > { %s1782_s21 = scalar_select %p1769_p7, %s1585_s11, %s2222_s20  }
  0x51   : > { %377 = sbr.rel (%p2223_p1) target bundleno = 663 (0x297), region = 48  ;;  %p2224_p6 = scmp.eq.s32.totalorder (!%p2223_p1), %s1694_s15, 0 }
  0x56   : > { %1556 = dma.done.wait (%p2224_p6), [#allocation5], 16   ;;  %p2225_p11 = pmov %p2224_p6 }
  0x57   : > { %s1791_s24 = sand.u32 1, %s1581_s10   ;;  %p2226_p3 = scmp.ne.s32.totalorder %s2210_s19, 0 }
  0x58   : > { %1558 = vsyncadd (%p2225_p11), [#allocation5], 4294967280  ;;  %s1280_s7 = smul.u32 384, %s1791_s24  ;;  %s384_s30 = scalar_lea.sflag [#allocation3], %s1791_s24 }
  0x5a   : > { %s1795_s26 = scalar_lea.vmem [#allocation6], %s1280_s7 }
  0x5b   : > { %1560 = dma.done.wait (%p2226_p3), %s384_s30, 6144  }
  0x5c   : > { %1562 = vsyncadd (%p2226_p3), %s384_s30, 4294961152  ;;  %p2227_p7 = pmov %p2224_p6 }
  0x5d   : > { %p2228_p8 = pmov %p2224_p6 }
  0x5e   : > { %1564 = dma.done.wait (%p2227_p7), [#allocation8], 512  }
  0x5f   : > { %1566 = vsyncadd (%p2228_p8), [#allocation8], 4294966784 }
  0x60   : > { %396 = sfence }
  0x61   : > { %v511_v0 = vld [vmem:[%s1795_s26 + $0xf8] sm:$0xff]  ;;  %v510_v1 = vld [vmem:[%s1795_s26 + $0xf0] sm:$0xff]  ;;  %v509_v2 = vld [vmem:[%s1795_s26 + $0xe8] sm:$0xff]  ;;  %v1606_v4 = vmov 0   ;;  %vm576_vm0 = vcmask 523264   ;;  %s2229_s3 = sld [smem:[#allocation25_spill]] }
  0x62   : > { %601 = vmatprep.subr.mxu0 %v511_v0  ;;  %v508_v3 = vld [vmem:[%s1795_s26 + $0xe0] sm:$0xff]  ;;  %1383 = vset.pattern.permute.xlu1 %v1606_v4  ;;  %v507_v5 = vld [vmem:[%s1795_s26 + $0xd8] sm:$0xff]  ;;  %v506_v6 = vld [vmem:[%s1795_s26 + $0xd0] sm:$0xff]  ;;  %p448_p9 = scmp.lt.s32.totalorder %s1589_s12, 1  ;;  %s460_s0 = sld [smem:[#allocation2]] }
  0x63   : > { %602 = vmatpush1.msra.mxu0 %v510_v1  ;;  %1382 = vset.pattern.permute.xlu0 %v1606_v4  ;;  %v505_v7 = vld [vmem:[%s1795_s26 + $0xc8] sm:$0xff]  ;;  %v504_v8 = vld [vmem:[%s1795_s26 + $0xc0] sm:$0xff]  ;;  %v503_v9 = vld [vmem:[%s1795_s26 + $0xb8] sm:$0xff]  ;;  %s1246_s9 = sld [smem:[#allocation2 + $0x1]]  ;;  %s980_s28 = sand.u32 1, %s1694_s15  }
  0x64   : > { %603 = vmatprep.subr.mxu0 %v509_v2  ;;  %v502_v10 = vld [vmem:[%s1795_s26 + $0xb0] sm:$0xff]  ;;  %v501_v11 = vld [vmem:[%s1795_s26 + $0xa8] sm:$0xff]  ;;  %v500_v12 = vld [vmem:[%s1795_s26 + $0xa0] sm:$0xff]  ;;  %s449_s14 = scalar_select %p448_p9, %s1589_s12, 1 }
  0x65   : > { %604 = vmatpush1.msra.mxu0 %v508_v3  ;;  %v499_v13 = vld [vmem:[%s1795_s26 + $0x98] sm:$0xff]  ;;  %v498_v14 = vld [vmem:[%s1795_s26 + $0x90] sm:$0xff]  ;;  %v497_v15 = vld [vmem:[%s1795_s26 + $0x88] sm:$0xff]  ;;  %s2230_s2 = sld [smem:[#allocation24_spill]]  ;;  %s1275_s22 = sshll.u32 %s1589_s12, 10 }
  0x66   : > { %605 = vmatprep.subr.mxu0 %v507_v5  ;;  %v496_v16 = vld [vmem:[%s1795_s26 + $0x80] sm:$0xff]  ;;  %v495_v17 = vld [vmem:[%s1795_s26 + $0x78] sm:$0xff]  ;;  %v494_v18 = vld [vmem:[%s1795_s26 + $0x70] sm:$0xff]  ;;  %s1274_s20 = sshll.u32 %s449_s14, 3  ;;  %s1247_s25 = sld [smem:[#allocation2 + $0x2]] }
  0x67   : > { %606 = vmatpush1.msra.mxu0 %v506_v6  ;;  %v493_v19 = vld [vmem:[%s1795_s26 + $0x68] sm:$0xff]  ;;  %v492_v21 = vld [vmem:[%s1795_s26 + $0x60] sm:$0xff]  ;;  %v491_v22 = vld [vmem:[%s1795_s26 + $0x58] sm:$0xff]  ;;  %s1248_s18 = sld [smem:[#allocation2 + $0x3]]  ;;  %s2052_s7 = scalar_lea.hbm %s2185_s8, %s1275_s22 }
  0x68   : > { %607 = vmatprep.subr.mxu0 %v505_v7  ;;  %v465_v20 = vld [vmem:[%s2229_s3 + $0x8] sm:$0xff]  ;;  %v490_v23 = vld [vmem:[%s1795_s26 + $0x50] sm:$0xff]  ;;  %v488_v25 = vld [vmem:[%s1795_s26 + $0x40] sm:$0xff]  ;;  %s2078_s1 = scalar_lea.sflag [#allocation11], %s980_s28 }
  0x69   : > { %608 = vmatpush1.msra.mxu0 %v504_v8  ;;  %1249 = vmatprep.mubr.msk.f32.mxu0 %vm576_vm0, %v465_v20  ;;  %v489_v24 = vld [vmem:[%s1795_s26 + $0x48] sm:$0xff]  ;;  %v535_v27 = vld [vmem:[%s2181_s4 + $0x38] sm:$0xff]  ;;  %v486_v29 = vld [vmem:[%s1795_s26 + $0x30] sm:$0xff] }
  0x6a   : > { %609 = vmatprep.subr.mxu0 %v503_v9  ;;  %v533_v26 = vld [vmem:[%s2181_s4 + $0x28] sm:$0xff]  ;;  %v487_v28 = vld [vmem:[%s1795_s26 + $0x38] sm:$0xff]  ;;  %573 = vperm.xlu0 %1382, %v535_v27   ;;  %v532_v30 = vld [vmem:[%s2181_s4 + $0x20] sm:$0xff] }
  0x6b   : > { %610 = vmatpush1.msra.mxu0 %v502_v10  ;;  %563 = vperm.xlu1 %1383, %v533_v26   ;;  %v485_v31 = vld [vmem:[%s1795_s26 + $0x28] sm:$0xff]  ;;  %v534_v32 = vld [vmem:[%s2181_s4 + $0x30] sm:$0xff]  ;;  %v484_v33 = vld [vmem:[%s1795_s26 + $0x20] sm:$0xff]  ;;  %s455_s19 = scalar_lea.vmem %s2230_s2, %s1274_s20  ;;  %s2231_s20 = sld [smem:[#allocation20_spill]] }
  0x6c   : > { %611 = vmatprep.subr.mxu0 %v501_v11  ;;  %v483_v34 = vld [vmem:[%s1795_s26 + $0x18] sm:$0xff]  ;;  %v482_v35 = vld [vmem:[%s1795_s26 + $0x10] sm:$0xff]  ;;  %v481_v37 = vld [vmem:[%s1795_s26 + $0x8] sm:$0xff] }
  0x6d   : > { %612 = vmatpush1.msra.mxu0 %v500_v12  ;;  %v530_v36 = vld [vmem:[%s2181_s4 + $0x10] sm:$0xff]  ;;  %v531_v38 = vld [vmem:[%s2181_s4 + $0x18] sm:$0xff]  ;;  %v480_v39 = vld [vmem:[%s1795_s26] sm:$0xff] }
  0x6e   : > { %613 = vmatprep.subr.mxu0 %v499_v13  ;;  %568 = vperm.xlu0 %1382, %v534_v32   ;;  %v527_v40 = vld [vmem:[%s1795_s26 + $0x178] sm:$0xff]  ;;  %v526_v41 = vld [vmem:[%s1795_s26 + $0x170] sm:$0xff]  ;;  %v528_v42 = vld [vmem:[%s2181_s4] sm:$0xff]  ;;  %v1607_v13 = vmov 0.0  }
  0x6f   : > { %614 = vmatpush1.msra.mxu0 %v498_v14  ;;  %558 = vperm.xlu1 %1383, %v532_v30   ;;  %v525_v43 = vld [vmem:[%s1795_s26 + $0x168] sm:$0xff]  ;;  %v524_v45 = vld [vmem:[%s1795_s26 + $0x160] sm:$0xff]  ;;  %v523_v46 = vld [vmem:[%s1795_s26 + $0x158] sm:$0xff] }
  0x70   : > { %615 = vmatprep.subr.mxu0 %v497_v15  ;;  %v529_v44 = vld [vmem:[%s2181_s4 + $0x8] sm:$0xff]  ;;  %v522_v47 = vld [vmem:[%s1795_s26 + $0x150] sm:$0xff]  ;;  %v734_v50 = vld [vmem:[%s2183_s6] sm:$0xff]  ;;  %834 = vmatprep.mubr.f32.mxu1 %v1607_v13 }
  0x71   : > { %616 = vmatpush1.msra.mxu0 %v496_v16  ;;  %v735_v48 = vld [vmem:[%s2183_s6 + $0x8] sm:$0xff]  ;;  %v520_v51 = vld [vmem:[%s1795_s26 + $0x140] sm:$0xff]  ;;  %v519_v52 = vld [vmem:[%s1795_s26 + $0x138] sm:$0xff]  ;;  %p2234_p13 = scmp.ne.s32.totalorder %s2231_s20, 0 }
  0x72   : > { %617 = vmatprep.subr.mxu0 %v495_v17  ;;  %553 = vperm.xlu0 %1382, %v531_v38   ;;  %v521_v49 = vld [vmem:[%s1795_s26 + $0x148] sm:$0xff]  ;;  %v518_v53 = vld [vmem:[%s1795_s26 + $0x130] sm:$0xff]  ;;  %v737_v54 = vld [vmem:[%s2183_s6 + $0x18] sm:$0xff] }
  0x73   : > { %618 = vmatpush1.msra.mxu0 %v494_v18  ;;  %548 = vperm.xlu1 %1383, %v530_v36   ;;  %v517_v55 = vld [vmem:[%s1795_s26 + $0x128] sm:$0xff]  ;;  %v736_v56 = vld [vmem:[%s2183_s6 + $0x10] sm:$0xff]  ;;  %v516_v57 = vld [vmem:[%s1795_s26 + $0x120] sm:$0xff] }
  0x74   : > { %619 = vmatprep.subr.mxu0 %v493_v19  ;;  %v515_v58 = vld [vmem:[%s1795_s26 + $0x118] sm:$0xff]  ;;  %v514_v59 = vld [vmem:[%s1795_s26 + $0x110] sm:$0xff]  ;;  %v513_v60 = vld [vmem:[%s1795_s26 + $0x108] sm:$0xff] }
  0x75   : > { %620 = vmatpush1.msra.mxu0 %v492_v21  ;;  %v512_v61 = vld [vmem:[%s1795_s26 + $0x100] sm:$0xff]  ;;  %v467_v63 = vld [vmem:[%s2229_s3 + $0x18] sm:$0xff]  ;;  %v466_v0 = vld [vmem:[%s2229_s3 + $0x10] sm:$0xff]  ;;  %s1959_s26 = sshll.u32 %s1791_s24, 6 }
  0x76   : > { %621 = vmatprep.subr.mxu0 %v491_v22  ;;  %543 = vperm.xlu0 %1382, %v529_v44   ;;  %v464_v62 = vld [vmem:[%s2229_s3] sm:$0xff]  ;;  %v469_v1 = vld [vmem:[%s2229_s3 + $0x28] sm:$0xff]  ;;  %v471_v3 = vld [vmem:[%s2229_s3 + $0x38] sm:$0xff]  ;;  %s1979_s23 = scalar_lea.vmem [#allocation12], %s1959_s26  ;;  %s1992_s29 = scalar_lea.vmem [#allocation9], %s1959_s26 }
  0x77   : > { %622 = vmatpush1.msra.mxu0 %v490_v23  ;;  %538 = vperm.xlu1 %1383, %v528_v42   ;;  %v468_v2 = vld [vmem:[%s2229_s3 + $0x20] sm:$0xff]  ;;  %v470_v4 = vld [vmem:[%s2229_s3 + $0x30] sm:$0xff]  ;;  %v473_v5 = vld [vmem:[%s2229_s3 + $0x48] sm:$0xff]  ;;  %s1996_s16 = scalar_lea.vmem [#allocation10], %s1959_s26  ;;  %s1037_s27 = sshll.u32 %s1979_s23, 4  ;;  %s2067_s27 = int_to_ptr.vmem [resolvable:$true] %s1037_s27 }
  0x78   : > { %623 = vmatprep.subr.mxu0 %v489_v24  ;;  %v472_v6 = vld [vmem:[%s2229_s3 + $0x40] sm:$0xff]  ;;  %v475_v7 = vld [vmem:[%s2229_s3 + $0x58] sm:$0xff]  ;;  %v474_v8 = vld [vmem:[%s2229_s3 + $0x50] sm:$0xff]  ;;  %s1019_s14 = sshll.u32 %s1996_s16, 4  ;;  %s2058_s14 = int_to_ptr.vmem [resolvable:$true] %s1019_s14 }
  0x79   : > { %624 = vmatpush1.msra.mxu0 %v488_v25  ;;  %v477_v9 = vld [vmem:[%s2229_s3 + $0x68] sm:$0xff]  ;;  %v476_v10 = vld [vmem:[%s2229_s3 + $0x60] sm:$0xff]  ;;  %v479_v11 = vld [vmem:[%s2229_s3 + $0x78] sm:$0xff]  ;;  %s1453_s30 = scalar_lea.vmem %s2058_s14, 1024 }
  0x7a   : > { %625 = vmatprep.subr.mxu0 %v487_v28  ;;  %740 = vperm.xlu0 %1382, %v734_v50   ;;  %v478_v12 = vld [vmem:[%s2229_s3 + $0x70] sm:$0xff]  ;;  %p1454_p12 = scmp.ne.s32.totalorder %s2058_s14, %s1453_s30 }
  0x7b   : > { %626 = vmatpush1.msra.mxu0 %v486_v29  ;;  %745 = vperm.xlu1 %1383, %v735_v48  }
  0x7c   : > { %627 = vmatprep.subr.mxu0 %v485_v31  ;;  %p1455_p2 = pnand %p1454_p12, %p2234_p13 }
  0x7d   : > { %628 = vmatpush1.msra.mxu0 %v484_v33 }
  0x7e   : > { %629 = vmatprep.subr.mxu0 %v483_v34  ;;  %750 = vperm.xlu0 %1382, %v736_v56   ;;  %p1456_p4 = pneg %p1455_p2 }
  0x7f   : > { %630 = vmatpush1.msra.mxu0 %v482_v35  ;;  %755 = vperm.xlu1 %1383, %v737_v54  }
  0x80   : > { %631 = vmatprep.subr.mxu0 %v481_v37 }
  0x81   : > { %632 = vmatpush1.msra.mxu0 %v480_v39 }
  0x82   : > { %649 = vmatprep.subr.mxu0 %v527_v40 }
  0x83   : > { %650 = vmatpush2.msra.mxu0 %v526_v41 }
  0x84   : > { %651 = vmatprep.subr.mxu0 %v525_v43 }
  0x85   : > { %652 = vmatpush2.msra.mxu0 %v524_v45 }
  0x86   : > { %653 = vmatprep.subr.mxu0 %v523_v46 }
  0x87   : > { %654 = vmatpush2.msra.mxu0 %v522_v47 }
  0x88   : > { %655 = vmatprep.subr.mxu0 %v521_v49 }
  0x89   : > { %656 = vmatpush2.msra.mxu0 %v520_v51 }
  0x8a   : > { %657 = vmatprep.subr.mxu0 %v519_v52 }
  0x8b   : > { %658 = vmatpush2.msra.mxu0 %v518_v53 }
  0x8c   : > { %659 = vmatprep.subr.mxu0 %v517_v55 }
  0x8d   : > { %660 = vmatpush2.msra.mxu0 %v516_v57 }
  0x8e   : > { %661 = vmatprep.subr.mxu0 %v515_v58 }
  0x8f   : > { %662 = vmatpush2.msra.mxu0 %v514_v59 }
  0x90   : > { %663 = vmatprep.subr.mxu0 %v513_v60 }
  0x91   : > { %664 = vmatpush2.msra.mxu0 %v512_v61 }
  0x92   : > { %666 = vmatmul.mubr.f32.vlgmr.msra.gmra.mxu0 %v464_v62 }
  0x93   : > { %1250 = vmatprep.mubr.msk.f32.mxu0 %vm576_vm0, %v467_v63 }
  0x96   : > { %672 = vmatmul.mubr.f32.gmra.mxu0 %v466_v0 }
  0x97   : > { %1251 = vmatprep.mubr.msk.f32.mxu0 %vm576_vm0, %v469_v1 }
  0x9a   : > { %678 = vmatmul.mubr.f32.gmra.mxu0 %v468_v2 }
  0x9b   : > { %1252 = vmatprep.mubr.msk.f32.mxu0 %vm576_vm0, %v471_v3 }
  0x9e   : > { %684 = vmatmul.mubr.f32.gmra.mxu0 %v470_v4 }
  0x9f   : > { %1253 = vmatprep.mubr.msk.f32.mxu0 %vm576_vm0, %v473_v5 }
  0xa2   : > { %690 = vmatmul.mubr.f32.gmra.mxu0 %v472_v6  ;;  %v730_v6 = vld [vmem:[#allocation7] sm:$0xff] }
  0xa3   : > { %1254 = vmatprep.mubr.msk.f32.mxu0 %vm576_vm0, %v475_v7  ;;  %v731_v7 = vld [vmem:[#allocation7 + $0x8] sm:$0xff] }
  0xa6   : > { %696 = vmatmul.mubr.f32.gmra.mxu0 %v474_v8  ;;  %v732_v8 = vld [vmem:[#allocation7 + $0x10] sm:$0xff] }
  0xa7   : > { %1255 = vmatprep.mubr.msk.f32.mxu0 %vm576_vm0, %v477_v9  ;;  %v733_v9 = vld [vmem:[#allocation7 + $0x18] sm:$0xff] }
  0xaa   : > { %702 = vmatmul.mubr.f32.gmra.mxu0 %v476_v10  ;;  %v873_v10 = vlaneseq }
  0xab   : > { %1256 = vmatprep.mubr.msk.f32.mxu0 %vm576_vm0, %v479_v11 }
  0xac   : > { %v874_v11 = vshrl.u32 %v873_v10, 7 }
  0xae   : > { %708 = vmatmul.mubr.f32.gmra.mxu0 %v478_v12  ;;  %v1261_v12 = vld [vmem:[%s455_s19 + $0x1] ss:$4 sm:$0x3] }
  0xe5   : > { %v574_v25 = vpop.permute.xlu0 %573 }
  0xe6   : > { %v564_v27 = vpop.permute.xlu1 %563 }
  0xe9   : > { %v569_v30 = vpop.permute.xlu0 %568 }
  0xea   : > { %v559_v32 = vpop.permute.xlu1 %558 }
  0xed   : > { %v554_v38 = vpop.permute.xlu0 %553 }
  0xee   : > { %v549_v43 = vpop.permute.xlu1 %548 }
  0xf1   : > { %v544_v52 = vpop.permute.xlu0 %543 }
  0xf2   : > { %v539_v57 = vpop.permute.xlu1 %538 }
 0x152   : > { %v667_v14 = vpop.f32.mrf.mxu0 }
 0x153   : > { %v668_v0 = vadd.f32 %v667_v14, %v539_v57  ;;  %v899_v14 = vstv %s460_s0  ;;  %s1001_s0 = sshll.u32 %s1992_s29, 4  ;;  %s2065_s0 = int_to_ptr.vmem [resolvable:$true] %s1001_s0 }
 0x154   : > { %v669_v15 = vpop.f32.mrf.mxu0 }
 0x155   : > { %v670_v62 = vadd.f32 %v669_v15, %v539_v57  ;;  %v714_v5 = vmax.f32 %v668_v0, 0.0  ;;  %v867_v15 = vld [vmem:[%s455_s19] ss:$4 sm:$0x3] }
 0x156   : > { %v673_v16 = vpop.f32.mrf.mxu0 }
 0x157   : > { %v674_v60 = vadd.f32 %v673_v16, %v544_v52  ;;  %v715_v4 = vmax.f32 %v670_v62, 0.0  ;;  %v937_v16 = vstv %s1246_s9  ;;  %s2233_s9 = sld [smem:[#allocation27_spill]] }
 0x158   : > { %v675_v17 = vpop.f32.mrf.mxu0 }
 0x159   : > { %v676_v58 = vadd.f32 %v675_v17, %v544_v52  ;;  %v716_v3 = vmax.f32 %v674_v60, 0.0  ;;  %v1262_v17 = vld [vmem:[%s455_s19 + $0x2] ss:$4 sm:$0x3]  ;;  %s1608_s19 = smov [#allocation10]  }
 0x15a   : > { %v679_v18 = vpop.f32.mrf.mxu0  ;;  %s1457_s2 = sshll.u32 %s1608_s19, 4  ;;  %s1458_s2 = int_to_ptr.vmem [resolvable:$false] %s1457_s2 }
 0x15b   : > { %v680_v55 = vadd.f32 %v679_v18, %v549_v43  ;;  %v717_v2 = vmax.f32 %v676_v58, 0.0  ;;  %v900_v18 = vsub.f32 %v1261_v12, %v899_v14  ;;  %s1459_s3 = scalar_lea.vmem %s1458_s2, 2048  ;;  %p1460_p10 = scmp.lt.s32.totalorder %s2058_s14, %s1458_s2 }
 0x15c   : > { %v681_v19 = vpop.f32.mrf.mxu0  ;;  %p1461_p5 = scmp.lt.s32.totalorder %s1459_s3, %s1453_s30 }
 0x15d   : > { %v682_v53 = vadd.f32 %v681_v19, %v549_v43  ;;  %v718_v1 = vmax.f32 %v680_v55, 0.0  ;;  %v938_v19 = vsub.f32 %v867_v15, %v937_v16  ;;  %s2074_s12 = scalar_lea.hbm %s2233_s9, %s1275_s22 }
 0x15e   : > { %v685_v20 = vpop.f32.mrf.mxu0  ;;  %p1462_p0 = por %p1461_p5, %p1460_p10 }
 0x15f   : > { %v686_v50 = vadd.f32 %v685_v20, %v554_v38  ;;  %v719_v63 = vmax.f32 %v682_v53, 0.0  ;;  %v879_v20 = vsub.s32 1, %v874_v11 }
 0x160   : > { %v687_v21 = vpop.f32.mrf.mxu0  ;;  %p1463_p1 = pnand %p1462_p0, %p1456_p4 }
 0x161   : > { %v688_v48 = vadd.f32 %v687_v21, %v554_v38  ;;  %v720_v61 = vmax.f32 %v686_v50, 0.0  ;;  %v741_v21 = vpop.permute.xlu0 %740  ;;  %v1974_v38 = vstv %s1247_s25  ;;  %s2232_s25 = sld [smem:[#allocation26_spill]] }
 0x162   : > { %v691_v22 = vpop.f32.mrf.mxu0 }
 0x163   : > { %v692_v46 = vadd.f32 %v691_v22, %v559_v32  ;;  %v721_v59 = vmax.f32 %v688_v48, 0.0 }
 0x164   : > { %v693_v23 = vpop.f32.mrf.mxu0 }
 0x165   : > { %v694_v44 = vadd.f32 %v693_v23, %v559_v32  ;;  %v722_v56 = vmax.f32 %v692_v46, 0.0  ;;  %v1969_v32 = vrot.slane %v900_v18, %v879_v20 }
 0x166   : > { %v697_v24 = vpop.f32.mrf.mxu0 }
 0x167   : > { %v698_v41 = vadd.f32 %v697_v24, %v564_v27  ;;  %v723_v54 = vmax.f32 %v694_v44, 0.0 }
 0x168   : > { %v699_v26 = vpop.f32.mrf.mxu0 }
 0x169   : > { %v700_v39 = vadd.f32 %v699_v26, %v564_v27  ;;  %v724_v51 = vmax.f32 %v698_v41, 0.0 }
 0x16a   : > { %v703_v28 = vpop.f32.mrf.mxu0 }
 0x16b   : > { %v704_v37 = vadd.f32 %v703_v28, %v569_v30  ;;  %v725_v49 = vmax.f32 %v700_v39, 0.0  ;;  %v1976_v39 = vstv %s1248_s18  ;;  %s2063_s18 = scalar_lea.hbm %s2232_s25, %s1275_s22 }
 0x16c   : > { %v705_v29 = vpop.f32.mrf.mxu0 }
 0x16d   : > { %v706_v35 = vadd.f32 %v705_v29, %v569_v30  ;;  %v726_v47 = vmax.f32 %v704_v37, 0.0  ;;  %v1967_v30 = vrot.slane %v1262_v17, %v879_v20 }
 0x16e   : > { %v709_v31 = vpop.f32.mrf.mxu0 }
 0x16f   : > { %v710_v33 = vadd.f32 %v709_v31, %v574_v25  ;;  %v727_v45 = vmax.f32 %v706_v35, 0.0  ;;  %v746_v31 = vpop.permute.xlu1 %745 }
 0x170   : > { %v711_v34 = vpop.f32.mrf.mxu0 }
 0x171   : > { %v712_v36 = vadd.f32 %v711_v34, %v574_v25  ;;  %v728_v42 = vmax.f32 %v710_v33, 0.0 }
 0x173   : > { %v729_v40 = vmax.f32 %v712_v36, 0.0  ;;  %v1972_v36 = vrot.slane %v938_v19, %v879_v20 }
 0x175   : > { %786 = vmatprep.subr.mxu1 %v729_v40 }
 0x176   : > { %787 = vmatpush1.msra.mxu1 %v728_v42 }
 0x177   : > { %788 = vmatprep.subr.mxu1 %v727_v45 }
 0x178   : > { %789 = vmatpush1.msra.mxu1 %v726_v47  ;;  %v751_v47 = vpop.permute.xlu0 %750 }
 0x179   : > { %790 = vmatprep.subr.mxu1 %v725_v49 }
 0x17a   : > { %791 = vmatpush1.msra.mxu1 %v724_v51 }
 0x17b   : > { %792 = vmatprep.subr.mxu1 %v723_v54 }
 0x17c   : > { %793 = vmatpush1.msra.mxu1 %v722_v56 }
 0x17d   : > { %794 = vmatprep.subr.mxu1 %v721_v59  ;;  %v756_v59 = vpop.permute.xlu1 %755 }
 0x17e   : > { %795 = vmatpush1.msra.mxu1 %v720_v61 }
 0x17f   : > { %796 = vmatprep.subr.mxu1 %v719_v63 }
 0x180   : > { %797 = vmatpush1.msra.mxu1 %v718_v1 }
 0x181   : > { %798 = vmatprep.subr.mxu1 %v717_v2 }
 0x182   : > { %799 = vmatpush1.msra.mxu1 %v716_v3 }
 0x183   : > { %800 = vmatprep.subr.mxu1 %v715_v4 }
 0x184   : > { %801 = vmatpush1.msra.mxu1 %v714_v5 }
 0x185   : > { %1257 = vmatmul.mubr.msk.f32.vlgmr.msra.gmra.mxu1 %vm576_vm0, %v730_v6 }
 0x186   : > { %840 = vmatprep.mubr.f32.mxu1 %v1607_v13 }
 0x189   : > { %1258 = vmatmul.mubr.msk.f32.gmra.mxu1 %vm576_vm0, %v731_v7 }
 0x18a   : > { %846 = vmatprep.mubr.f32.mxu1 %v1607_v13 }
 0x18d   : > { %1259 = vmatmul.mubr.msk.f32.gmra.mxu1 %vm576_vm0, %v732_v8 }
 0x18e   : > { %852 = vmatprep.mubr.f32.mxu1 %v1607_v13  ;;  %v875_v13 = vsub.s32 0, %v874_v11 }
 0x190   : > { %v1961_v24 = vrot.slane %v1262_v17, %v875_v13  ;;  %v1963_v25 = vrot.slane %v900_v18, %v875_v13  ;;  %v1965_v28 = vrot.slane %v938_v19, %v875_v13 }
 0x191   : > { %1260 = vmatmul.mubr.msk.f32.gmra.mxu1 %vm576_vm0, %v733_v9 }
 0x245   : > { %v836_v22 = vpop.f32.mrf.mxu1 }
 0x246   : > { %v837_v23 = vadd.f32 %v836_v22, %v741_v21 }
 0x247   : > { %v838_v26 = vpop.f32.mrf.mxu1 }
 0x248   : > { %v859_v27 = vmax.f32 %v837_v23, 0.0  ;;  %v839_v29 = vadd.f32 %v838_v26, %v741_v21 }
 0x249   : > { %v842_v33 = vpop.f32.mrf.mxu1 }
 0x24a   : > { %v883_v34 = vmul.f32 %v1961_v24, %v859_v27  ;;  %v860_v35 = vmax.f32 %v839_v29, 0.0  ;;  %v843_v37 = vadd.f32 %v842_v33, %v746_v31 }
 0x24b   : > { %v844_v40 = vpop.f32.mrf.mxu1 }
 0x24c   : > { %891 = vst [vmem:[%s1979_s23] sm:$0xff] %v883_v34  ;;  %v912_v41 = vmul.f32 %v1963_v25, %v883_v34  ;;  %v950_v42 = vmul.f32 %v1965_v28, %v883_v34  ;;  %v884_v43 = vmul.f32 %v1967_v30, %v860_v35  ;;  %v861_v44 = vmax.f32 %v843_v37, 0.0 }
 0x24d   : > { %v845_v45 = vadd.f32 %v844_v40, %v746_v31  ;;  %v848_v46 = vpop.f32.mrf.mxu1 }
 0x24e   : > { %v921_v48 = vmul.f32 %v1974_v38, %v912_v41  ;;  %v959_v49 = vmul.f32 %v1976_v39, %v950_v42  ;;  %892 = vst [vmem:[%s1979_s23 + $0x8] sm:$0xff] %v884_v43  ;;  %v913_v50 = vmul.f32 %v1969_v32, %v884_v43  ;;  %v951_v51 = vmul.f32 %v1972_v36, %v884_v43 }
 0x24f   : > { %v885_v52 = vmul.f32 %v1961_v24, %v861_v44  ;;  %v862_v53 = vmax.f32 %v845_v45, 0.0  ;;  %v849_v54 = vadd.f32 %v848_v46, %v751_v47  ;;  %v850_v55 = vpop.f32.mrf.mxu1 }
 0x250   : > { %929 = vst [vmem:[%s1992_s29] sm:$0xff] %v921_v48  ;;  %967 = vst [vmem:[%s1996_s16] sm:$0xff] %v959_v49  ;;  %v922_v56 = vmul.f32 %v1974_v38, %v913_v50  ;;  %v960_v57 = vmul.f32 %v1976_v39, %v951_v51  ;;  %v851_v58 = vadd.f32 %v850_v55, %v751_v47 }
 0x251   : > { %893 = vst [vmem:[%s1979_s23 + $0x10] sm:$0xff] %v885_v52  ;;  %v914_v60 = vmul.f32 %v1963_v25, %v885_v52  ;;  %v952_v61 = vmul.f32 %v1965_v28, %v885_v52  ;;  %v886_v62 = vmul.f32 %v1967_v30, %v862_v53  ;;  %v863_v63 = vmax.f32 %v849_v54, 0.0  ;;  %v854_v0 = vpop.f32.mrf.mxu1 }
 0x252   : > { %930 = vst [vmem:[%s1992_s29 + $0x8] sm:$0xff] %v922_v56  ;;  %968 = vst [vmem:[%s1996_s16 + $0x8] sm:$0xff] %v960_v57  ;;  %v864_v1 = vmax.f32 %v851_v58, 0.0  ;;  %v855_v2 = vadd.f32 %v854_v0, %v756_v59 }
 0x253   : > { %v923_v3 = vmul.f32 %v1974_v38, %v914_v60  ;;  %v961_v4 = vmul.f32 %v1976_v39, %v952_v61  ;;  %894 = vst [vmem:[%s1979_s23 + $0x18] sm:$0xff] %v886_v62  ;;  %v915_v5 = vmul.f32 %v1969_v32, %v886_v62  ;;  %v953_v6 = vmul.f32 %v1972_v36, %v886_v62  ;;  %v856_v7 = vpop.f32.mrf.mxu1 }
 0x254   : > { %v887_v8 = vmul.f32 %v1961_v24, %v863_v63  ;;  %v888_v9 = vmul.f32 %v1967_v30, %v864_v1  ;;  %v865_v10 = vmax.f32 %v855_v2, 0.0  ;;  %v857_v11 = vadd.f32 %v856_v7, %v756_v59 }
 0x255   : > { %931 = vst [vmem:[%s1992_s29 + $0x10] sm:$0xff] %v923_v3  ;;  %969 = vst [vmem:[%s1996_s16 + $0x10] sm:$0xff] %v961_v4  ;;  %v924_v12 = vmul.f32 %v1974_v38, %v915_v5  ;;  %v962_v14 = vmul.f32 %v1976_v39, %v953_v6 }
 0x256   : > { %895 = vst [vmem:[%s1979_s23 + $0x20] sm:$0xff] %v887_v8  ;;  %v916_v15 = vmul.f32 %v1963_v25, %v887_v8  ;;  %v954_v16 = vmul.f32 %v1965_v28, %v887_v8  ;;  %896 = vst [vmem:[%s1979_s23 + $0x28] sm:$0xff] %v888_v9  ;;  %v917_v13 = vmul.f32 %v1969_v32, %v888_v9  ;;  %v866_v19 = vmax.f32 %v857_v11, 0.0 }
 0x257   : > { %v955_v17 = vmul.f32 %v1972_v36, %v888_v9  ;;  %932 = vst [vmem:[%s1992_s29 + $0x18] sm:$0xff] %v924_v12  ;;  %970 = vst [vmem:[%s1996_s16 + $0x18] sm:$0xff] %v962_v14  ;;  %v889_v18 = vmul.f32 %v1961_v24, %v865_v10 }
 0x258   : > { %v925_v20 = vmul.f32 %v1974_v38, %v916_v15  ;;  %v963_v21 = vmul.f32 %v1976_v39, %v954_v16  ;;  %v926_v22 = vmul.f32 %v1974_v38, %v917_v13  ;;  %v890_v27 = vmul.f32 %v1967_v30, %v866_v19 }
 0x259   : > { %v964_v23 = vmul.f32 %v1976_v39, %v955_v17  ;;  %897 = vst [vmem:[%s1979_s23 + $0x30] sm:$0xff] %v889_v18  ;;  %v918_v26 = vmul.f32 %v1963_v25, %v889_v18  ;;  %v956_v24 = vmul.f32 %v1965_v28, %v889_v18 }
 0x25a   : > { %933 = vst [vmem:[%s1992_s29 + $0x20] sm:$0xff] %v925_v20  ;;  %971 = vst [vmem:[%s1996_s16 + $0x20] sm:$0xff] %v963_v21  ;;  %v919_v25 = vmul.f32 %v1969_v32, %v890_v27  ;;  %v957_v28 = vmul.f32 %v1972_v36, %v890_v27 }
 0x25b   : > { %934 = vst [vmem:[%s1992_s29 + $0x28] sm:$0xff] %v926_v22  ;;  %972 = vst [vmem:[%s1996_s16 + $0x28] sm:$0xff] %v964_v23  ;;  %v927_v29 = vmul.f32 %v1974_v38, %v918_v26  ;;  %v965_v31 = vmul.f32 %v1976_v39, %v956_v24 }
 0x25c   : > { %898 = vst [vmem:[%s1979_s23 + $0x38] sm:$0xff] %v890_v27  ;;  %v928_v30 = vmul.f32 %v1974_v38, %v919_v25  ;;  %v966_v33 = vmul.f32 %v1976_v39, %v957_v28 }
 0x25d   : > { %935 = vst [vmem:[%s1992_s29 + $0x30] sm:$0xff] %v927_v29  ;;  %973 = vst [vmem:[%s1996_s16 + $0x30] sm:$0xff] %v965_v31 }
 0x25e   : > { %936 = vst [vmem:[%s1992_s29 + $0x38] sm:$0xff] %v928_v30  ;;  %974 = vst [vmem:[%s1996_s16 + $0x38] sm:$0xff] %v966_v33 }
 0x25f   : > { %1466 = shalt.err (!%p1463_p1)
}
 0x260   : > { %s1467_s15 = scalar_lea.hbm %s2052_s7, 1024  ;;  %s1471_s28 = scalar_lea.hbm %s2185_s8, 2048 }
 0x261   : > { %p1468_p6 = scmp.ne.s32.totalorder %s2052_s7, %s1467_s15  ;;  %p1472_p7 = scmp.lt.s32.totalorder %s2052_s7, %s2185_s8 }
 0x262   : > { %p1473_p8 = scmp.lt.s32.totalorder %s1471_s28, %s1467_s15 }
 0x263   : > { %p1469_p11 = pnand %p1468_p6, %p2234_p13 }
 0x264   : > { %p1474_p9 = por %p1473_p8, %p1472_p7 }
 0x265   : > { %p1470_p3 = pneg %p1469_p11 }
 0x267   : > { %p1475_p12 = pnand %p1474_p9, %p1470_p3 }
 0x269   : > { %1478 = shalt.err (!%p1475_p12)
}
 0x26a   : > { %s1609_s2 = smov 256   ;;  %s1610_s3 = smov 16  }
 0x26b   : > { %1292 = dma.vmem_to_hbm [thread:$0]  (%p2234_p13), %s2058_s14, 1024, %s2052_s7, %s2078_s1, %s1609_s2, %s1609_s2, %s1610_s3  }
 0x26c   : > { %s976_s23 = scalar_lea.sflag [#allocation4], %s1791_s24  ;;  %s1479_s30 = scalar_lea.vmem %s2065_s0, 1024 }
 0x26d   : > { %p1480_p2 = scmp.ne.s32.totalorder %s2065_s0, %s1479_s30  ;;  %s1611_s19 = smov [#allocation9]  }
 0x26e   : > { %s1483_s15 = sshll.u32 %s1611_s19, 4  ;;  %s1484_s15 = int_to_ptr.vmem [resolvable:$false] %s1483_s15 }
 0x26f   : > { %p1481_p4 = pnand %p1480_p2, %p2234_p13  ;;  %s1485_s29 = scalar_lea.vmem %s1484_s15, 2048 }
 0x270   : > { %p1486_p5 = scmp.lt.s32.totalorder %s2065_s0, %s1484_s15  ;;  %p1487_p0 = scmp.lt.s32.totalorder %s1485_s29, %s1479_s30 }
 0x271   : > { %p1482_p10 = pneg %p1481_p4 }
 0x272   : > { %p1488_p1 = por %p1487_p0, %p1486_p5 }
 0x274   : > { %p1489_p6 = pnand %p1488_p1, %p1482_p10 }
 0x276   : > { %1492 = shalt.err (!%p1489_p6)
}
 0x277   : > { %s1493_s14 = scalar_lea.hbm %s2063_s18, 1024  ;;  %s1497_s16 = scalar_lea.hbm %s2232_s25, 2048 }
 0x278   : > { %p1494_p11 = scmp.ne.s32.totalorder %s2063_s18, %s1493_s14  ;;  %p1498_p8 = scmp.lt.s32.totalorder %s2063_s18, %s2232_s25 }
 0x279   : > { %p1499_p9 = scmp.lt.s32.totalorder %s1497_s16, %s1493_s14 }
 0x27a   : > { %p1495_p3 = pnand %p1494_p11, %p2234_p13 }
 0x27b   : > { %p1500_p12 = por %p1499_p9, %p1498_p8 }
 0x27c   : > { %p1496_p7 = pneg %p1495_p3 }
 0x27e   : > { %p1501_p2 = pnand %p1500_p12, %p1496_p7 }
 0x280   : > { %1504 = shalt.err (!%p1501_p2)
}
 0x281   : > { %1291 = dma.vmem_to_hbm [thread:$0]  (%p2234_p13), %s2065_s0, 1024, %s2063_s18, %s976_s23, %s1609_s2, %s1609_s2, %s1610_s3  }
 0x282   : > { %s1505_s26 = scalar_lea.vmem %s2067_s27, 1024  ;;  %s1612_s30 = smov [#allocation12]  }
 0x283   : > { %p1506_p4 = scmp.ne.s32.totalorder %s2067_s27, %s1505_s26  ;;  %s1509_s19 = sshll.u32 %s1612_s30, 4  ;;  %s1510_s19 = int_to_ptr.vmem [resolvable:$false] %s1509_s19 }
 0x284   : > { %s1511_s15 = scalar_lea.vmem %s1510_s19, 2048  ;;  %p1512_p0 = scmp.lt.s32.totalorder %s2067_s27, %s1510_s19 }
 0x285   : > { %p1507_p10 = pnand %p1506_p4, %p2234_p13  ;;  %p1513_p1 = scmp.lt.s32.totalorder %s1511_s15, %s1505_s26 }
 0x287   : > { %p1508_p5 = pneg %p1507_p10  ;;  %p1514_p6 = por %p1513_p1, %p1512_p0 }
 0x289   : > { %p1515_p11 = pnand %p1514_p6, %p1508_p5 }
 0x28b   : > { %1518 = shalt.err (!%p1515_p11)
}
 0x28c   : > { %s1519_s29 = scalar_lea.hbm %s2074_s12, 1024  ;;  %s1523_s23 = scalar_lea.hbm %s2233_s9, 2048 }
 0x28d   : > { %p1520_p3 = scmp.ne.s32.totalorder %s2074_s12, %s1519_s29  ;;  %p1524_p9 = scmp.lt.s32.totalorder %s2074_s12, %s2233_s9 }
 0x28e   : > { %p1525_p12 = scmp.lt.s32.totalorder %s1523_s23, %s1519_s29 }
 0x28f   : > { %p1521_p7 = pnand %p1520_p3, %p2234_p13 }
 0x290   : > { %p1526_p2 = por %p1525_p12, %p1524_p9 }
 0x291   : > { %p1522_p8 = pneg %p1521_p7 }
 0x293   : > { %p1527_p4 = pnand %p1526_p2, %p1522_p8 }
 0x295   : > { %1530 = shalt.err (!%p1527_p4)
}
 0x296   : > { %1293 = dma.vmem_to_hbm [thread:$0]  (%p2234_p13), %s2067_s27, 1024, %s2074_s12, %s2078_s1, %s1609_s2, %s1609_s2, %s1610_s3  }
 0x297 PF: > { %s2235_s7 = sld [smem:[#allocation18_spill]] }
 0x298   : > { %s2236_s16 = sld [smem:[#allocation21_spill]] }
 0x299   : > { %s2237_s28 = sld [smem:[#allocation19_spill]] }
 0x29d   : > { %s1052_s22 = sand.u32 1, %s2235_s7  }
 0x29e   : > { %p2238_p10 = scmp.ne.s32.totalorder %s2236_s16, 0  ;;  %s1053_s26 = scalar_lea.sflag [#allocation4], %s1052_s22 }
 0x29f   : > { %p2239_p5 = scmp.ge.s32.totalorder %s2237_s28, 2 }
 0x2a1   : > { %p1309_p0 = pnand %p2239_p5, %p2238_p10 }
 0x2a3   : > { %p1310_p1 = pneg %p1309_p0 }
 0x2a5   : > { %1568 = dma.done.wait (%p1310_p1), %s1053_s26, 1024  }
 0x2a6   : > { %1570 = vsyncadd (%p1310_p1), %s1053_s26, 4294966272  ;;  %s2240_s20 = sadd.s32 4294967294, %s2237_s28  }
 0x2a7   : > { %s1061_s30 = sand.u32 1, %s2240_s20  }
 0x2a8   : > { %s1062_s19 = scalar_lea.sflag [#allocation11], %s1061_s30 }
 0x2a9   : > { %1572 = dma.done.wait (%p1310_p1), %s1062_s19, 2048  }
 0x2aa   : > { %1574 = vsyncadd (%p1310_p1), %s1062_s19, 4294965248  ;;  %s31_s14 = sadd.s32 1, %s2237_s28   ;;  %s2241_s30 = smov %s1581_s10 }
 0x2ab   : > { %p28_p13 = scmp.ge.s32.totalorder %s31_s14, 4   ;;  %s2242_s10 = smov %s1585_s11 }
 0x2ac   : > { %s2243_s11 = smov %s1782_s21  ;;  %s2244_s12 = smov %s1593_s13 }
 0x2ad   : > { %s2245_s13 = smov %s2247_s17  ;;  %30 = sbr.rel (!%p28_p13) target bundleno = 17 (0x11), region = 139 }
 0x2b2   :  { %1076 = vsyncpa [#allocation3], 1 }
 0x2b3   :  { %1078 = vsyncpa [#allocation3 + $0x1], 1 }
 0x2b4   :  { %1079 = vsyncpa [#allocation8], 1 }
 0x2b5   :  { %1080 = vsyncpa [#allocation4], 1 }
 0x2b6   :  { %1082 = vsyncpa [#allocation4 + $0x1], 1 }
 0x2b7   :  { %1083 = vsyncpa [#allocation11], 1 }
 0x2b8   :  { %1085 = vsyncpa [#allocation11 + $0x1], 1 }
 0x2b9   :  { %1086 = vsyncpa [#allocation5], 1 }
 0x2ba   :  { %1088 = vsyncpa [#allocation5 + $0x1], 1 }

</bundles_post_ra>
